<compile_context>
chip_gen: v7x
topology: tpu7x:2x2x1
jax: 0.10.0
libtpu: 0.0.40
codegen_flags: <defaults>
</compile_context>

<pallas_src>
import jax
import jax.numpy as jnp
from jax.experimental import pallas as pl
from jax.experimental.pallas import tpu as pltpu


def _one_hot_kernel(labels_ref, out_ref):
    # labels_ref: (1, TILE_N)           int32   (labels along lanes)
    # out_ref:    (num_classes, TILE_N) out_dtype (class axis on sublanes)
    labels = labels_ref[...]                                          # (1, TILE_N)
    classes = jax.lax.broadcasted_iota(jnp.int32, out_ref.shape, 0)   # (C, TILE_N)
    out_ref[...] = (labels == classes).astype(out_ref.dtype)


def one_hot_pallas(labels, num_classes=10, *, tile_n=65536, dtype=jnp.float32,
                   transposed_output=False, min_pallas_n=1024):
    """Pallas equivalent of F.one_hot(labels, num_classes).astype(dtype).

    If ``transposed_output`` is True, returns shape (num_classes, *labels.shape)
    (lane-dense layout, no host-side transpose) for consumers that can fuse it.
    """
    labels = jnp.asarray(labels, dtype=jnp.int32)
    orig_shape = labels.shape
    flat = labels.reshape(-1)
    n = flat.shape[0]

    # Tiny / empty inputs: the fixed pallas_call + padding cost dominates,
    # plain XLA one-hot is cheaper and semantically identical.
    if n == 0 or n < min_pallas_n:
        out = jax.nn.one_hot(labels, num_classes, dtype=dtype)
        if transposed_output:
            return jnp.moveaxis(out, -1, 0)
        return out

    # Lane-aligned problem size.
    n_128 = pl.cdiv(n, 128) * 128

    # Tile: multiple of 128, clamped to the problem size; default 64K lanes
    # (~2.6 MiB f32 output / step) amortizes per-step pipeline overhead.
    tile_n = max(128, min(int(tile_n), n_128))
    tile_n = pl.cdiv(tile_n, 128) * 128
    # Keep >= 2 grid steps whenever possible so the "parallel" axis can be
    # sharded across both TensorCores on v7x.
    if n_128 >= 2 * 128:
        half = pl.cdiv(pl.cdiv(n_128, 2), 128) * 128
        tile_n = min(tile_n, half)

    n_pad = pl.cdiv(n, tile_n) * tile_n
    if n_pad != n:
        # -1 never matches a class id -> padded columns are all-zero, sliced off below.
        flat = jnp.pad(flat, (0, n_pad - n), constant_values=-1)
    labels2d = flat.reshape(1, n_pad)

    # Scoped-VMEM budget: double-buffered input (4 B/lane) + output
    # (itemsize*num_classes B/lane).  Only raise the limit when a large
    # user-requested tile would overflow v5e's 16 MiB scoped default.
    itemsize = jnp.dtype(dtype).itemsize
    vmem_needed = 2 * (4 + itemsize * num_classes) * tile_n
    compiler_kwargs = dict(dimension_semantics=("parallel",))
    if vmem_needed > 12 * 1024 * 1024:
        compiler_kwargs["vmem_limit_bytes"] = min(
            int(vmem_needed * 1.5) + (4 << 20), 96 << 20)

    grid = (n_pad // tile_n,)
    out_t = pl.pallas_call(
        _one_hot_kernel,
        out_shape=jax.ShapeDtypeStruct((num_classes, n_pad), dtype),
        grid=grid,
        in_specs=[pl.BlockSpec((1, tile_n), lambda i: (0, i))],
        out_specs=pl.BlockSpec((num_classes, tile_n), lambda i: (0, i)),
        compiler_params=pltpu.CompilerParams(**compiler_kwargs),
    )(labels2d)

    if n_pad != n:
        out_t = out_t[:, :n]

    if transposed_output:
        # Lane-dense layout handed straight to the consumer: no extra HBM pass.
        return out_t.reshape(num_classes, *orig_shape)

    # F.one_hot layout.  The slice+transpose+reshape is a single post-kernel
    # copy; fuse it into the downstream op (or use transposed_output=True)
    # when this one-hot feeds a matmul.
    out = out_t.T
    return out.reshape(*orig_shape, num_classes)


if __name__ == "__main__":
    key = jax.random.PRNGKey(0)
    num_classes = 10

    # Small example consistent with the module: batch=2, seq=8 class ids.
    # (Takes the jax.nn.one_hot fallback path by design.)
    labels = jax.random.randint(key, (2, 8), minval=0, maxval=num_classes,
                                dtype=jnp.int32)
    result = jax.block_until_ready(one_hot_pallas(labels, num_classes=num_classes))
    ref = jax.nn.one_hot(labels, num_classes, dtype=jnp.float32)
    assert result.shape == (2, 8, num_classes)
    assert result.dtype == jnp.float32
    assert jnp.array_equal(result, ref)

    # Larger input exercising the Pallas path (multi-step grid + lane padding).
    key2 = jax.random.PRNGKey(1)
    labels2 = jax.random.randint(key2, (3, 700), minval=0, maxval=num_classes,
                                 dtype=jnp.int32)
    result2 = jax.block_until_ready(one_hot_pallas(labels2, num_classes=num_classes))
    ref2 = jax.nn.one_hot(labels2, num_classes, dtype=jnp.float32)
    assert result2.shape == (3, 700, num_classes)
    assert jnp.array_equal(result2, ref2)

    # Transposed (lane-dense) output path: no host-side transpose.
    result2_t = jax.block_until_ready(
        one_hot_pallas(labels2, num_classes=num_classes, transposed_output=True))
    assert result2_t.shape == (num_classes, 3, 700)
    assert jnp.array_equal(result2_t, jnp.moveaxis(ref2, -1, 0))

    # Parameterized dtype (bf16 halves the dominant output write stream).
    result2_bf16 = jax.block_until_ready(
        one_hot_pallas(labels2, num_classes=num_classes, dtype=jnp.bfloat16))
    assert result2_bf16.dtype == jnp.bfloat16
    assert jnp.array_equal(result2_bf16.astype(jnp.float32), ref2)

    print("KERNEL_OK")
</pallas_src>

<mosaic_0001>
module attributes {stable_mosaic.version = 11 : i64} {
  func.func @_one_hot_kernel(%arg0: i32, %arg1: memref<1x1152xi32, #tpu.memory_space<vmem>>, %arg2: memref<10x1152xf32, #tpu.memory_space<vmem>>) attributes {dimension_semantics = [#tpu.dimension_semantics<parallel>], iteration_bounds = array<i64: 2>, scalar_prefetch = 0 : i64, scratch_operands = 0 : i64, tpu.core_type = #tpu.core_type<tc>, window_params = [{transform_indices = @transform_0, window_bounds = array<i64: 1, 1152>}, {transform_indices = @transform_1, window_bounds = array<i64: 10, 1152>}]} {
    %c0 = arith.constant 0 : index
    %c0_0 = arith.constant 0 : index
    %0 = vector.load %arg1[%c0, %c0_0] : memref<1x1152xi32, #tpu.memory_space<vmem>>, vector<1x1152xi32>
    %1 = tpu.iota {dimensions = array<i32: 0>} : vector<10x1152xi32>
    %2 = vector.broadcast %0 : vector<1x1152xi32> to vector<10x1152xi32>
    %3 = arith.cmpi eq, %2, %1 : vector<10x1152xi32>
    %4 = arith.extui %3 : vector<10x1152xi1> to vector<10x1152xi32>
    %5 = arith.sitofp %4 : vector<10x1152xi32> to vector<10x1152xf32>
    %c0_1 = arith.constant 0 : index
    %c0_2 = arith.constant 0 : index
    %6 = vector.load %arg2[%c0_1, %c0_2] : memref<10x1152xf32, #tpu.memory_space<vmem>>, vector<10x1152xf32>
    tpu.vector_store %arg2[%c0_1, %c0_2], %5 {strides = array<i32>} : memref<10x1152xf32, #tpu.memory_space<vmem>>, vector<10x1152xf32>,
    return
  }
  func.func @transform_0(%arg0: i32) -> (i32, i32) {
    %c0_i32 = arith.constant 0 : i32
    %c0_i32_0 = arith.constant 0 : i32
    return %c0_i32, %arg0 : i32, i32
  }
  func.func @transform_1(%arg0: i32) -> (i32, i32) {
    %c0_i32 = arith.constant 0 : i32
    %c0_i32_0 = arith.constant 0 : i32
    return %c0_i32, %arg0 : i32, i32
  }
}

</mosaic_0001>

<bundles_post_ra>
// kernel: tpu_custom_call.1
= control target key start
LH: loop header
LB: loop body
LE: loop exit
PB: predicated region body
PF: predicated region fallthrough
CT: control target
= control target key end

     0   :  { %6 = vsyncpa [#allocation3], 0  ;;  %s725_s0 = inlined_call_operand.hbm [shape: s32[1,2304], index: 0, kind: input, shape index: {}]   ;;  %s726_s1 = inlined_call_operand.hbm [shape: f32[10,2304], index: 1, kind: output, shape index: {}]  }
   0x1   :  { %8 = vsyncpa [#allocation3 + $0x1], 0 }
   0x2   :  { %9 = vsyncpa [#allocation4], 0 }
   0x3   :  { %11 = vsyncpa [#allocation4 + $0x1], 0  ;;  %s531_s6 = smov 0   ;;  %s533_s7 = smov 0  }
   0x4   :  { %s535_s8 = smov 0   ;;  %s537_s9 = smov 0  }
   0x5 LB: > { %s552_s10 = sadd.s32 4294967295, %s513_s9   ;;  %s335_s11 = sadd.s32 4294967294, %s513_s9   ;;  %s513_s9 = sphi %s537_s9, %s740_s9   ;;  %s509_s8 = sphi %s535_s8, %s739_s8   ;;  %s505_s7 = sphi %s533_s7, %s738_s7   ;;  %s501_s6 = sphi %s531_s6, %s737_s6  }
   0x6   : > { %s556_s12 = sadd.s32 1, %s513_s9   ;;  %s24_s13 = sadd.s32 1, %s509_s8 }
   0x7   : > { %s21_s14 = ssub.s32 %s513_s9, %s556_s12  ;;  %p31_p0 = scmp.ne.s32.totalorder %s509_s8, %s505_s7 }
   0x8   : > { %p22_p1 = scmp.eq.s32.totalorder %s21_s14, 0  ;;  %p32_p2 = scmp.eq.s32.totalorder %s513_s9, 0 }
   0x9   : > { %p37_p3 = scmp.ne.s32.totalorder %s505_s7, %s501_s6  ;;  %p38_p4 = scmp.eq.s32.totalorder %s552_s10, 0 }
   0xa   : > { %s568_s15 = scalar_select %p22_p1, %s509_s8, %s24_s13  }
   0xb   : > { %p33_p5 = por %p32_p2, %p31_p0  ;;  %p570_p6 = por %p38_p4, %p37_p3 }
   0xc   : > { %p61_p7 = scmp.eq.s32.totalorder %s552_s10, 1  ;;  %p67_p8 = scmp.eq.s32.totalorder %s335_s11, 1 }
   0xd   : > { %p379_p10 = scmp.lt.s32.totalorder %s513_s9, 2  ;;  %s87_s19 = sand.u32 1, %s509_s8  }
   0xe   : > { %p577_p11 = por %p61_p7, %p31_p0  ;;  %p581_p12 = por %p67_p8, %p37_p3 }
   0xf   : > { %s362_s20 = smul.u32 144, %s513_s9  ;;  %p592_p13 = pnand %p379_p10, %p33_p5 }
  0x10   : > { %s729_s17 = scalar_select %p577_p11, 1, 0 }
  0x11   : > { %s730_s18 = scalar_select %p581_p12, 1, 0 }
  0x12   : > { %s364_s21 = smul.u32 9, %s87_s19  ;;  %s590_s24 = scalar_lea.hbm %s725_s0, %s362_s20 }
  0x13   : > { %s88_s28 = scalar_lea.sflag [#allocation3], %s87_s19  ;;  %s417_s29 = scalar_lea.hbm %s590_s24, 144 }
  0x14   : > { %s91_s26 = scalar_lea.vmem [#allocation2], %s364_s21  ;;  %p418_p2 = scmp.ne.s32.totalorder %s590_s24, %s417_s29 }
  0x15   : > { %s99_s27 = sshll.u32 %s91_s26, 4  ;;  %p419_p3 = pneg %p592_p13  ;;  %s597_s27 = int_to_ptr.vmem [resolvable:$true] %s99_s27 }
  0x16   : > { %s422_s3 = scalar_lea.hbm %s725_s0, 288  ;;  %p423_p7 = scmp.lt.u32.totalorder %s590_s24, %s725_s0 }
  0x17   : > { %p420_p4 = pnand %p419_p3, %p418_p2  ;;  %p424_p8 = scmp.lt.u32.totalorder %s422_s3, %s417_s29 }
  0x18   : > { %p426_p9 = scmp.lt.u32.totalorder %s417_s29, %s590_s24 }
  0x19   : > { %p421_p5 = pneg %p420_p4  ;;  %p425_p10 = por %p424_p8, %p423_p7 }
  0x1b   : > { %p427_p0 = por %p426_p9, %p425_p10 }
  0x1d   : > { %p428_p1 = pnand %p427_p0, %p421_p5 }
  0x1f   : > { %431 = shalt.err (!%p428_p1)
}
  0x20   : > { %s432_s11 = scalar_lea.vmem %s597_s27, 144  ;;  %s515_s13 = smov [#allocation2]  }
  0x21   : > { %p433_p2 = scmp.ne.s32.totalorder %s597_s27, %s432_s11  ;;  %s437_s14 = sshll.u32 %s515_s13, 4  ;;  %s438_s14 = int_to_ptr.vmem [resolvable:$false] %s437_s14 }
  0x22   : > { %s439_s19 = scalar_lea.vmem %s438_s14, 288  ;;  %p440_p11 = scmp.lt.s32.totalorder %s597_s27, %s438_s14 }
  0x23   : > { %p435_p4 = pnand %p433_p2, %p419_p3  ;;  %p441_p7 = scmp.lt.s32.totalorder %s439_s19, %s432_s11 }
  0x25   : > { %p436_p12 = pneg %p435_p4  ;;  %p442_p8 = por %p441_p7, %p440_p11 }
  0x27   : > { %p443_p9 = pnand %p442_p8, %p436_p12 }
  0x29   : > { %446 = shalt.err (!%p443_p9)
}
  0x2a   : > { %374 = dma.hbm_to_vmem [thread:$0]  (!%p592_p13), %s590_s24, 144, %s597_s27, %s88_s28  }
  0x2b   : > { %p732_p0 = scmp.lt.s32.totalorder %s513_s9, 3  ;;  %p733_p1 = scmp.ge.s32.totalorder %s513_s9, 1 }
  0x2d   : > { %p105_p3 = pnand %p733_p1, %p732_p0 }
  0x2e   : > { %s630_s20 = sand.u32 (!%p105_p3), 1, %s505_s7  }
  0x2f   : > { %108 = sbr.rel (%p105_p3) target bundleno = 89 (0x59), region = 24  ;;  %s111_s22 = scalar_lea.sflag (!%p105_p3), [#allocation3], %s630_s20 }
  0x30   : > { %s365_s21 = smul.u32 (!%p105_p3), 9, %s630_s20 }
  0x32   : > { %s634_s23 = scalar_lea.vmem (!%p105_p3), [#allocation2], %s365_s21 }
  0x36   : > { %492 = dma.done.wait (%p570_p6), %s111_s22, 144  }
  0x37   : > { %494 = vsyncadd (%p570_p6), %s111_s22, 4294967152  ;;  %v137_v0 = vlaneseq  ;;  %s366_s24 = smul.u32 144, %s630_s20  ;;  %v135_v10 = vld [vmem:[%s634_s23] sm:$0xff]  ;;  %v516_v20 = vmov 0.0   ;;  %v340_v25 = vld [vmem:[%s634_s23 + $0x8] ss:$0 sm:$0xff] }
  0x38   : > { %s363_s25 = smul.u32 1152, %s552_s10  ;;  %s249_s29 = scalar_lea.sflag [#allocation4], %s630_s20 }
  0x39   : > { %v138_v1 = vshrl.u32 %v137_v0, 7  ;;  %s645_s16 = scalar_lea.vmem [#allocation5], %s366_s24  ;;  %p734_p11 = scmp.ne.s32.totalorder %s729_s17, 0 }
  0x3a   : > { %s262_s10 = sshll.u32 %s645_s16, 4  ;;  %s671_s28 = scalar_lea.hbm %s726_s1, %s363_s25  ;;  %s679_s10 = int_to_ptr.vmem [resolvable:$true] %s262_s10 }
  0x3b   : > { %v142_v2 = vsub.s32 0, %v138_v1  ;;  %v146_v3 = vsub.s32 1, %v138_v1  ;;  %v150_v4 = vsub.s32 2, %v138_v1  ;;  %v154_v5 = vsub.s32 3, %v138_v1  ;;  %s447_s30 = scalar_lea.vmem %s679_s10, 2304  ;;  %s517_s2 = smov [#allocation5]  }
  0x3c   : > { %v158_v6 = vsub.s32 4, %v138_v1  ;;  %v162_v7 = vsub.s32 5, %v138_v1  ;;  %v166_v8 = vsub.s32 6, %v138_v1  ;;  %v170_v9 = vsub.s32 7, %v138_v1  ;;  %p448_p6 = scmp.ne.s32.totalorder %s679_s10, %s447_s30  ;;  %s451_s3 = sshll.u32 %s517_s2, 4  ;;  %s452_s3 = int_to_ptr.vmem [resolvable:$false] %s451_s3 }
  0x3d   : > { %v642_v11 = vadd.s32 8, %v138_v1  ;;  %v143_v12 = vrot.slane %v135_v10, %v142_v2  ;;  %v147_v13 = vrot.slane %v135_v10, %v146_v3  ;;  %v151_v14 = vrot.slane %v135_v10, %v150_v4  ;;  %s453_s4 = scalar_lea.vmem %s452_s3, 4608  ;;  %p454_p5 = scmp.lt.s32.totalorder %s679_s10, %s452_s3 }
  0x3e   : > { %v155_v15 = vrot.slane %v135_v10, %v154_v5  ;;  %v159_v16 = vrot.slane %v135_v10, %v158_v6  ;;  %v163_v17 = vrot.slane %v135_v10, %v162_v7  ;;  %v167_v18 = vrot.slane %v135_v10, %v166_v8  ;;  %p449_p12 = pnand %p448_p6, %p734_p11  ;;  %p455_p10 = scmp.lt.s32.totalorder %s453_s4, %s447_s30 }
  0x3f   : > { %v171_v19 = vrot.slane %v135_v10, %v170_v9  ;;  %vm176_vm0 = vcmp.eq.s32.totalorder %v143_v12, %v138_v1  ;;  %vm177_vm1 = vcmp.eq.s32.totalorder %v147_v13, %v138_v1  ;;  %vm178_vm2 = vcmp.eq.s32.totalorder %v151_v14, %v138_v1 }
  0x40   : > { %vm179_vm3 = vcmp.eq.s32.totalorder %v155_v15, %v138_v1  ;;  %v341_v21 = vsel %vm176_vm0, 1.0, %v516_v20  ;;  %v342_v22 = vsel %vm177_vm1, 1.0, %v516_v20  ;;  %v343_v23 = vsel %vm178_vm2, 1.0, %v516_v20  ;;  %p450_p13 = pneg %p449_p12  ;;  %p456_p2 = por %p455_p10, %p454_p5 }
  0x41   : > { %v344_v24 = vsel %vm179_vm3, 1.0, %v516_v20  ;;  %230 = vst [vmem:[%s645_s16] sm:$0xff] %v341_v21  ;;  %231 = vst [vmem:[%s645_s16 + $0x8] sm:$0xff] %v342_v22  ;;  %vm180_vm4 = vcmp.eq.s32.totalorder %v159_v16, %v138_v1  ;;  %vm181_vm5 = vcmp.eq.s32.totalorder %v163_v17, %v138_v1  ;;  %vm182_vm6 = vcmp.eq.s32.totalorder %v167_v18, %v138_v1 }
  0x42   : > { %232 = vst [vmem:[%s645_s16 + $0x10] sm:$0xff] %v343_v23  ;;  %233 = vst [vmem:[%s645_s16 + $0x18] sm:$0xff] %v344_v24  ;;  %vm183_vm7 = vcmp.eq.s32.totalorder %v171_v19, %v138_v1  ;;  %v345_v26 = vsel %vm180_vm4, 1.0, %v516_v20  ;;  %v346_v27 = vsel %vm181_vm5, 1.0, %v516_v20  ;;  %v347_v28 = vsel %vm182_vm6, 1.0, %v516_v20  ;;  %p457_p4 = pnand %p456_p2, %p450_p13 }
  0x43   : > { %v348_v29 = vsel %vm183_vm7, 1.0, %v516_v20  ;;  %234 = vst [vmem:[%s645_s16 + $0x20] sm:$0xff] %v345_v26  ;;  %235 = vst [vmem:[%s645_s16 + $0x28] sm:$0xff] %v346_v27  ;;  %vm184_vm8 = vcmp.eq.s32.totalorder %v340_v25, %v138_v1  ;;  %vm185_vm9 = vcmp.eq.s32.totalorder %v143_v12, %v642_v11  ;;  %vm186_vm10 = vcmp.eq.s32.totalorder %v147_v13, %v642_v11 }
  0x44   : > { %236 = vst [vmem:[%s645_s16 + $0x30] sm:$0xff] %v347_v28  ;;  %237 = vst [vmem:[%s645_s16 + $0x38] sm:$0xff] %v348_v29  ;;  %vm187_vm11 = vcmp.eq.s32.totalorder %v151_v14, %v642_v11  ;;  %v349_v30 = vsel %vm184_vm8, 1.0, %v516_v20  ;;  %v350_v31 = vsel %vm185_vm9, 1.0, %v516_v20  ;;  %v351_v32 = vsel %vm186_vm10, 1.0, %v516_v20 }
  0x45   : > { %v352_v33 = vsel %vm187_vm11, 1.0, %v516_v20  ;;  %238 = vst [vmem:[%s645_s16 + $0x40] sm:$0xff] %v349_v30  ;;  %239 = vst [vmem:[%s645_s16 + $0x48] sm:$0x3] %v350_v31  ;;  %vm188_vm12 = vcmp.eq.s32.totalorder %v155_v15, %v642_v11  ;;  %vm189_vm13 = vcmp.eq.s32.totalorder %v159_v16, %v642_v11  ;;  %vm190_vm14 = vcmp.eq.s32.totalorder %v163_v17, %v642_v11 }
  0x46   : > { %240 = vst [vmem:[%s645_s16 + $0x50] sm:$0x3] %v351_v32  ;;  %241 = vst [vmem:[%s645_s16 + $0x58] sm:$0x3] %v352_v33  ;;  %vm191_vm15 = vcmp.eq.s32.totalorder %v167_v18, %v642_v11  ;;  %v353_v34 = vsel %vm188_vm12, 1.0, %v516_v20  ;;  %v354_v35 = vsel %vm189_vm13, 1.0, %v516_v20  ;;  %vm192_vm0 = vcmp.eq.s32.totalorder %v171_v19, %v642_v11 }
  0x47   : > { %v355_v36 = vsel %vm190_vm14, 1.0, %v516_v20  ;;  %v356_v37 = vsel %vm191_vm15, 1.0, %v516_v20  ;;  %242 = vst [vmem:[%s645_s16 + $0x60] sm:$0x3] %v353_v34  ;;  %243 = vst [vmem:[%s645_s16 + $0x68] sm:$0x3] %v354_v35  ;;  %vm193_vm1 = vcmp.eq.s32.totalorder %v340_v25, %v642_v11 }
  0x48   : > { %244 = vst [vmem:[%s645_s16 + $0x70] sm:$0x3] %v355_v36  ;;  %245 = vst [vmem:[%s645_s16 + $0x78] sm:$0x3] %v356_v37  ;;  %v357_v38 = vsel %vm192_vm0, 1.0, %v516_v20  ;;  %v358_v39 = vsel %vm193_vm1, 1.0, %v516_v20 }
  0x49   : > { %246 = vst [vmem:[%s645_s16 + $0x80] sm:$0x3] %v357_v38  ;;  %247 = vst [vmem:[%s645_s16 + $0x88] sm:$0x3] %v358_v39 }
  0x4a   : > { %460 = shalt.err (!%p457_p4)
}
  0x4b   : > { %s461_s5 = scalar_lea.hbm %s671_s28, 2304  ;;  %s465_s14 = scalar_lea.hbm %s726_s1, 4608 }
  0x4c   : > { %p462_p7 = scmp.ne.s32.totalorder %s671_s28, %s461_s5  ;;  %p466_p0 = scmp.lt.u32.totalorder %s671_s28, %s726_s1 }
  0x4d   : > { %p467_p1 = scmp.lt.u32.totalorder %s465_s14, %s461_s5  ;;  %p469_p6 = scmp.lt.u32.totalorder %s461_s5, %s671_s28 }
  0x4e   : > { %p463_p8 = pnand %p462_p7, %p734_p11 }
  0x4f   : > { %p468_p3 = por %p467_p1, %p466_p0 }
  0x50   : > { %p464_p9 = pneg %p463_p8 }
  0x51   : > { %p470_p12 = por %p469_p6, %p468_p3 }
  0x53   : > { %p471_p13 = pnand %p470_p12, %p464_p9 }
  0x55   : > { %474 = shalt.err (!%p471_p13)
}
  0x56   : > { %s518_s22 = smov 1152   ;;  %s519_s23 = smov 2304  }
  0x57   : > { %s520_s24 = smov 72  }
  0x58   : > { %369 = dma.vmem_to_hbm [thread:$0]  (%p734_p11), %s679_s10, 2304, %s671_s28, %s249_s29, %s518_s22, %s519_s23, %s520_s24  }
  0x59 PF: > { %s277_s16 = sand.u32 1, %s501_s6   ;;  %p735_p5 = scmp.ne.s32.totalorder %s730_s18, 0 }
  0x5a   : > { %p736_p10 = scmp.ge.s32.totalorder %s513_s9, 2  ;;  %s278_s25 = scalar_lea.sflag [#allocation4], %s277_s16 }
  0x5c   : > { %p376_p2 = pnand %p736_p10, %p735_p5 }
  0x5e   : > { %496 = dma.done.wait (!%p376_p2), %s278_s25, 2304  }
  0x5f   : > { %498 = vsyncadd (!%p376_p2), %s278_s25, 4294964992  ;;  %p14_p4 = scmp.ge.s32.totalorder %s556_s12, 4   ;;  %s737_s6 = smov %s505_s7 }
  0x60   : > { %s738_s7 = smov %s509_s8  ;;  %s739_s8 = smov %s568_s15 }
  0x61   : > { %s740_s9 = smov %s556_s12  ;;  %16 = sbr.rel (!%p14_p4) target bundleno = 5 (0x5), region = 69 }
  0x68   :  { %283 = vsyncpa [#allocation3], 1 }
  0x69   :  { %285 = vsyncpa [#allocation3 + $0x1], 1 }
  0x6a   :  { %286 = vsyncpa [#allocation4], 1 }
  0x6b   :  { %288 = vsyncpa [#allocation4 + $0x1], 1 }

</bundles_post_ra>
